<compile_context>
chip_gen: v6e
topology: v6e:2x2x1
jax: 0.10.0
libtpu: 0.0.40
codegen_flags: <defaults>
</compile_context>

<pallas_src>
import functools

import jax
import jax.numpy as jnp
from jax.experimental import pallas as pl
from jax.experimental.pallas import tpu as pltpu


def _round_up(x, m):
    return (x + m - 1) // m * m


def _pick_tile(extent, align, max_tile):
    """Pick a tile size (multiple of `align`, <= max_tile) minimizing padding waste."""
    ext = _round_up(extent, align)
    if ext <= max_tile:
        return ext  # single tile, only alignment padding
    cands = []
    t = max_tile
    while t >= align:
        cands.append(t)
        t //= 2
    best_t, best_pad = cands[0], _round_up(ext, cands[0])
    for t in cands:
        pad = _round_up(ext, t)
        if pad < best_pad:
            best_t, best_pad = t, pad
    return best_t


# ---------------------------------------------------------------------------
# Kernel 1: h = tanh(x @ W1 + b1)   (tiny: (TB,H)x(H,H), one pass over batch)
# ---------------------------------------------------------------------------
def transition_kernel(x_ref, w1_ref, b1_ref, h_ref):
    acc = jnp.dot(x_ref[...], w1_ref[...], preferred_element_type=jnp.float32)
    h_ref[...] = jnp.tanh(acc + b1_ref[...]).astype(h_ref.dtype)


# ---------------------------------------------------------------------------
# Kernel 2: out = h @ W2 + b2       (dominant kernel: streams W2/b2/out tiles)
# ---------------------------------------------------------------------------
def fc_kernel(h_ref, w2_ref, b2_ref, o_ref):
    out = jnp.dot(h_ref[...], w2_ref[...], preferred_element_type=jnp.float32)
    o_ref[...] = (out + b2_ref[...]).astype(o_ref.dtype)


# ---------------------------------------------------------------------------
# One-time parameter preparation (hoisted out of the per-call forward path):
# cast the big weights to bf16 and pre-pad W2/b2 along n_items.
# ---------------------------------------------------------------------------
def prepare_params(params, *, tn_max=4096):
    w1 = params["transition_w"]          # (H, H)   stored (in, out)
    b1 = params["transition_b"]          # (H,)
    w2 = params["fc_w"]                  # (H, N)   stored (in, out)
    b2 = params["fc_b"]                  # (N,)
    H = w1.shape[0]
    N = w2.shape[1]

    TN = _pick_tile(N, 128, tn_max)
    N_pad = _round_up(N, TN)

    bf16 = jnp.bfloat16
    w1_bf = w1.astype(bf16)                                               # (H, H)
    b1_p = b1.astype(jnp.float32).reshape(1, H)                           # (1, H)
    w2_p = jnp.zeros((H, N_pad), bf16).at[:, :N].set(w2.astype(bf16))     # (H, N_pad)
    b2_p = jnp.zeros((1, N_pad), jnp.float32).at[0, :N].set(
        b2.astype(jnp.float32))                                           # (1, N_pad)

    return {
        "user_embedding": params["user_embedding"],
        "w1": w1_bf, "b1": b1_p, "w2": w2_p, "b2": b2_p,
        "H": H, "N": N, "N_pad": N_pad, "TN": TN,
    }


def random_walk_forward(user_ids, prepared, *, tb_max=256):
    table = prepared["user_embedding"]        # (n_users, H) f32
    w1, b1 = prepared["w1"], prepared["b1"]
    w2, b2 = prepared["w2"], prepared["b2"]
    H, N, N_pad, TN = prepared["H"], prepared["N"], prepared["N_pad"], prepared["TN"]

    B = user_ids.shape[0]
    bf16 = jnp.bfloat16

    # glue: embedding lookup (gather) == nn.Embedding(user_ids).
    # TODO(synk): could be fused via scalar-prefetch row gather; x is tiny, low priority.
    x = jnp.take(table, user_ids, axis=0).astype(bf16)        # (B, H)

    TB = _pick_tile(B, 8, tb_max)
    B_pad = _round_up(B, TB)
    x_p = jnp.zeros((B_pad, H), bf16).at[:B, :].set(x)

    # ---- kernel 1: h = tanh(x @ W1 + b1) --------------------------------
    h = pl.pallas_call(
        transition_kernel,
        out_shape=jax.ShapeDtypeStruct((B_pad, H), bf16),
        grid=(B_pad // TB,),
        in_specs=[
            pl.BlockSpec((TB, H), lambda i: (i, 0)),
            pl.BlockSpec((H, H), lambda i: (0, 0)),
            pl.BlockSpec((1, H), lambda i: (0, 0)),
        ],
        out_specs=pl.BlockSpec((TB, H), lambda i: (i, 0)),
        compiler_params=pltpu.CompilerParams(
            dimension_semantics=("parallel",),
        ),
    )(x_p, w1, b1)

    # ---- kernel 2: out = h @ W2 + b2 (streams W2/b2/out along n_items) --
    grid = (B_pad // TB, N_pad // TN)

    # Double-buffered working-set estimate (bytes): h + W2 + b2 + out tiles.
    vmem_est = 2 * (TB * H * 2 + H * TN * 2 + TN * 4 + TB * TN * 4)
    vmem_limit = min(48 * 1024 * 1024, max(16 * 1024 * 1024, 2 * vmem_est))

    flops = 2 * B_pad * H * N_pad
    bytes_accessed = (B_pad * H * 2 + H * N_pad * 2 + N_pad * 4 + B_pad * N_pad * 4)

    out_padded = pl.pallas_call(
        fc_kernel,
        out_shape=jax.ShapeDtypeStruct((B_pad, N_pad), jnp.float32),
        grid=grid,
        in_specs=[
            # h: constant across the n_items axis -> VMEM-resident per batch tile.
            pl.BlockSpec((TB, H), lambda i, j: (i, 0)),
            # W2 / b2: streamed tile-by-tile along n_items (double-buffered).
            pl.BlockSpec((H, TN), lambda i, j: (0, j)),
            pl.BlockSpec((1, TN), lambda i, j: (0, j)),
        ],
        out_specs=pl.BlockSpec((TB, TN), lambda i, j: (i, j)),
        compiler_params=pltpu.CompilerParams(
            # No cross-step state -> both axes parallel (v7x can shard n_items
            # across its two TensorCores even with a single batch tile).
            dimension_semantics=("parallel", "parallel"),
            vmem_limit_bytes=int(vmem_limit),
        ),
        cost_estimate=pl.CostEstimate(
            flops=int(flops),
            transcendentals=0,
            bytes_accessed=int(bytes_accessed),
        ),
    )(h, w2, b2)

    return out_padded[:B, :N]


def init_params(key, n_users, n_items, hidden_size):
    k_ue, k_ie, k_w1, k_b1, k_w2, k_b2 = jax.random.split(key, 6)
    # nn.Embedding default init: N(0, 1)
    user_embedding = jax.random.normal(k_ue, (n_users, hidden_size), jnp.float32)
    # item_embedding exists in __init__ but is unused in forward; kept for parity.
    item_embedding = jax.random.normal(k_ie, (n_items, hidden_size), jnp.float32)
    # nn.Linear default init: U(-1/sqrt(fan_in), 1/sqrt(fan_in)); weights stored (in, out)
    bound1 = 1.0 / jnp.sqrt(hidden_size)
    transition_w = jax.random.uniform(
        k_w1, (hidden_size, hidden_size), jnp.float32, -bound1, bound1)
    transition_b = jax.random.uniform(
        k_b1, (hidden_size,), jnp.float32, -bound1, bound1)
    fc_w = jax.random.uniform(
        k_w2, (hidden_size, n_items), jnp.float32, -bound1, bound1)
    fc_b = jax.random.uniform(
        k_b2, (n_items,), jnp.float32, -bound1, bound1)
    return {
        "user_embedding": user_embedding,
        "item_embedding": item_embedding,
        "transition_w": transition_w,
        "transition_b": transition_b,
        "fc_w": fc_w,
        "fc_b": fc_b,
    }


if __name__ == "__main__":
    # Small synthetic shapes consistent with the module (hidden_size=64 default).
    n_users, n_items, hidden_size, batch = 32, 256, 64, 8

    key = jax.random.PRNGKey(0)
    k_params, k_ids = jax.random.split(key)
    params = init_params(k_params, n_users, n_items, hidden_size)
    user_ids = jax.random.randint(k_ids, (batch,), 0, n_users, dtype=jnp.int32)

    # Weight cast/pad done ONCE, outside the per-call forward path.
    prepared = prepare_params(params)
    fwd = jax.jit(functools.partial(random_walk_forward, prepared=prepared))

    out = jax.block_until_ready(fwd(user_ids))

    # pure-JAX f32 reference (kernel uses bf16 MXU operands / bf16 h with f32
    # accumulation, so tolerance is loosened accordingly).
    x_ref = jnp.take(params["user_embedding"], user_ids, axis=0)
    h_ref = jnp.tanh(x_ref @ params["transition_w"] + params["transition_b"])
    ref = h_ref @ params["fc_w"] + params["fc_b"]
    assert out.shape == (batch, n_items)
    max_err = float(jnp.max(jnp.abs(out - ref)))
    assert jnp.allclose(out, ref, atol=7.5e-2, rtol=7.5e-2), max_err

    print("KERNEL_OK")
</pallas_src>

<mosaic_0001>
module attributes {stable_mosaic.version = 11 : i64} {
  func.func @fc_kernel(%arg0: i32, %arg1: i32, %arg2: memref<8x64xbf16, #tpu.memory_space<vmem>>, %arg3: memref<64x256xbf16, #tpu.memory_space<vmem>>, %arg4: memref<1x256xf32, #tpu.memory_space<vmem>>, %arg5: memref<8x256xf32, #tpu.memory_space<vmem>>) attributes {dimension_semantics = [#tpu.dimension_semantics<parallel>, #tpu.dimension_semantics<parallel>], iteration_bounds = array<i64: 1, 1>, scalar_prefetch = 0 : i64, scratch_operands = 0 : i64, tpu.core_type = #tpu.core_type<tc>, window_params = [{transform_indices = @transform_0, window_bounds = array<i64: 8, 64>}, {transform_indices = @transform_1, window_bounds = array<i64: 64, 256>}, {transform_indices = @transform_2, window_bounds = array<i64: 1, 256>}, {transform_indices = @transform_3, window_bounds = array<i64: 8, 256>}]} {
    %c0 = arith.constant 0 : index
    %c0_0 = arith.constant 0 : index
    %0 = vector.load %arg2[%c0, %c0_0] : memref<8x64xbf16, #tpu.memory_space<vmem>>, vector<8x64xbf16>
    %c0_1 = arith.constant 0 : index
    %c0_2 = arith.constant 0 : index
    %1 = vector.load %arg3[%c0_1, %c0_2] : memref<64x256xbf16, #tpu.memory_space<vmem>>, vector<64x256xbf16>
    %cst = arith.constant dense<0.000000e+00> : vector<8x256xf32>
    %2 = tpu.matmul %0, %1, %cst {dimension_numbers = #tpu.dot_dimension_numbers<[1], [0], [0], [1], [0, 0, 1, 1], [], []>} : vector<8x64xbf16>, vector<64x256xbf16>, vector<8x256xf32> -> vector<8x256xf32>
    %c0_3 = arith.constant 0 : index
    %c0_4 = arith.constant 0 : index
    %3 = vector.load %arg4[%c0_3, %c0_4] : memref<1x256xf32, #tpu.memory_space<vmem>>, vector<1x256xf32>
    %4 = vector.broadcast %3 : vector<1x256xf32> to vector<8x256xf32>
    %5 = arith.addf %2, %4 : vector<8x256xf32>
    %c0_5 = arith.constant 0 : index
    %c0_6 = arith.constant 0 : index
    %6 = vector.load %arg5[%c0_5, %c0_6] : memref<8x256xf32, #tpu.memory_space<vmem>>, vector<8x256xf32>
    tpu.vector_store %arg5[%c0_5, %c0_6], %5 {strides = array<i32>} : memref<8x256xf32, #tpu.memory_space<vmem>>, vector<8x256xf32>,
    return
  }
  func.func @transform_0(%arg0: i32, %arg1: i32) -> (i32, i32) {
    %c0_i32 = arith.constant 0 : i32
    %c0_i32_0 = arith.constant 0 : i32
    return %arg0, %c0_i32 : i32, i32
  }
  func.func @transform_1(%arg0: i32, %arg1: i32) -> (i32, i32) {
    %c0_i32 = arith.constant 0 : i32
    %c0_i32_0 = arith.constant 0 : i32
    return %c0_i32, %arg1 : i32, i32
  }
  func.func @transform_2(%arg0: i32, %arg1: i32) -> (i32, i32) {
    %c0_i32 = arith.constant 0 : i32
    %c0_i32_0 = arith.constant 0 : i32
    return %c0_i32, %arg1 : i32, i32
  }
  func.func @transform_3(%arg0: i32, %arg1: i32) -> (i32, i32) {
    %c0_i32 = arith.constant 0 : i32
    return %arg0, %arg1 : i32, i32
  }
}

module attributes {stable_mosaic.version = 11 : i64} {
  func.func @transition_kernel(%arg0: i32, %arg1: memref<8x64xbf16, #tpu.memory_space<vmem>>, %arg2: memref<64x64xbf16, #tpu.memory_space<vmem>>, %arg3: memref<1x64xf32, #tpu.memory_space<vmem>>, %arg4: memref<8x64xbf16, #tpu.memory_space<vmem>>) attributes {dimension_semantics = [#tpu.dimension_semantics<parallel>], iteration_bounds = array<i64: 1>, scalar_prefetch = 0 : i64, scratch_operands = 0 : i64, tpu.core_type = #tpu.core_type<tc>, window_params = [{transform_indices = @transform_0, window_bounds = array<i64: 8, 64>}, {pipeline_mode = #tpu.pipeline_mode<synchronous>, transform_indices = @transform_1, window_bounds = array<i64: 64, 64>}, {pipeline_mode = #tpu.pipeline_mode<synchronous>, transform_indices = @transform_2, window_bounds = array<i64: 1, 64>}, {transform_indices = @transform_3, window_bounds = array<i64: 8, 64>}]} {
    %c0 = arith.constant 0 : index
    %c0_0 = arith.constant 0 : index
    %0 = vector.load %arg1[%c0, %c0_0] : memref<8x64xbf16, #tpu.memory_space<vmem>>, vector<8x64xbf16>
    %c0_1 = arith.constant 0 : index
    %c0_2 = arith.constant 0 : index
    %1 = vector.load %arg2[%c0_1, %c0_2] : memref<64x64xbf16, #tpu.memory_space<vmem>>, vector<64x64xbf16>
    %cst = arith.constant dense<0.000000e+00> : vector<8x64xf32>
    %2 = tpu.matmul %0, %1, %cst {dimension_numbers = #tpu.dot_dimension_numbers<[1], [0], [0], [1], [0, 0, 1, 1], [], []>} : vector<8x64xbf16>, vector<64x64xbf16>, vector<8x64xf32> -> vector<8x64xf32>
    %c0_3 = arith.constant 0 : index
    %c0_4 = arith.constant 0 : index
    %3 = vector.load %arg3[%c0_3, %c0_4] : memref<1x64xf32, #tpu.memory_space<vmem>>, vector<1x64xf32>
    %4 = vector.broadcast %3 : vector<1x64xf32> to vector<8x64xf32>
    %5 = arith.addf %2, %4 : vector<8x64xf32>
    %6 = math.tanh %5 : vector<8x64xf32>
    %7 = arith.truncf %6 : vector<8x64xf32> to vector<8x64xbf16>
    %c0_5 = arith.constant 0 : index
    %c0_6 = arith.constant 0 : index
    %8 = vector.load %arg4[%c0_5, %c0_6] : memref<8x64xbf16, #tpu.memory_space<vmem>>, vector<8x64xbf16>
    tpu.vector_store %arg4[%c0_5, %c0_6], %7 {strides = array<i32>} : memref<8x64xbf16, #tpu.memory_space<vmem>>, vector<8x64xbf16>,
    return
  }
  func.func @transform_0(%arg0: i32) -> (i32, i32) {
    %c0_i32 = arith.constant 0 : i32
    %c0_i32_0 = arith.constant 0 : i32
    return %arg0, %c0_i32 : i32, i32
  }
  func.func @transform_1(%arg0: i32) -> (i32, i32) {
    %c0_i32 = arith.constant 0 : i32
    %c0_i32_0 = arith.constant 0 : i32
    %c0_i32_1 = arith.constant 0 : i32
    return %c0_i32, %c0_i32_0 : i32, i32
  }
  func.func @transform_2(%arg0: i32) -> (i32, i32) {
    %c0_i32 = arith.constant 0 : i32
    %c0_i32_0 = arith.constant 0 : i32
    %c0_i32_1 = arith.constant 0 : i32
    return %c0_i32, %c0_i32_0 : i32, i32
  }
  func.func @transform_3(%arg0: i32) -> (i32, i32) {
    %c0_i32 = arith.constant 0 : i32
    %c0_i32_0 = arith.constant 0 : i32
    return %arg0, %c0_i32 : i32, i32
  }
}

</mosaic_0001>

<bundles_post_ra>
// kernel: random_walk_forward.3
= control target key start
LH: loop header
LB: loop body
LE: loop exit
PB: predicated region body
PF: predicated region fallthrough
CT: control target
= control target key end

     0   :  { %v183_v2 = vmov 0   ;;  %s238_s0 = inlined_call_operand.vmem [shape: bf16[8,64], index: 0, kind: input, shape index: {}]   ;;  %s239_s1 = inlined_call_operand.vmem [shape: bf16[64,256], index: 1, kind: input, shape index: {}]   ;;  %s240_s2 = inlined_call_operand.vmem [shape: f32[1,256], index: 2, kind: input, shape index: {}]   ;;  %s241_s3 = inlined_call_operand.hbm [shape: f32[8,256], index: 3, kind: output, shape index: {}]  }
   0x1   :  { %v149_v0 = vld [vmem:[%s239_s1 + $0x34] ss:$8 sps:$4 sm:$0xff]   ;;  %v151_v1 = vld [vmem:[%s239_s1 + $0x30] ss:$8 sps:$4 sm:$0xff]   ;;  %113 = vmatprep.mubr.bf16.mxu0 %v183_v2  ;;  %v152_v3 = vld [vmem:[%s239_s1 + $0x24] ss:$8 sps:$4 sm:$0xff]  }
   0x2   :  { %89 = vmatprep.subr.bf16.mxu0 %v149_v0  ;;  %v154_v4 = vld [vmem:[%s239_s1 + $0x20] ss:$8 sps:$4 sm:$0xff]   ;;  %v155_v5 = vld [vmem:[%s239_s1 + $0x14] ss:$8 sps:$4 sm:$0xff]  }
   0x3   :  { %90 = vmatpush1.bf16.msra.mxu0 %v151_v1 }
   0x4   :  { %91 = vmatprep.subr.bf16.mxu0 %v152_v3 }
   0x5   :  { %8 = vsyncpa [#allocation3], 0  ;;  %v157_v6 = vld [vmem:[%s239_s1 + $0x10] ss:$8 sps:$4 sm:$0xff]   ;;  %v158_v7 = vld [vmem:[%s239_s1 + $0x4] ss:$8 sps:$4 sm:$0xff]   ;;  %v27_v10 = vlaneseq }
   0x6   :  { %v160_v8 = vld [vmem:[%s239_s1] ss:$8 sps:$4 sm:$0xff]   ;;  %vm77_vm0 = vcmask 523264   ;;  %s184_s1 = smov [#allocation2]  }
   0x7   :  { %92 = vmatpush1.bf16.msra.mxu0 %v154_v4  ;;  %v16_v9 = vld [vmem:[%s238_s0] sm:$0xf]  ;;  %v28_v11 = vshrl.u32 %v27_v10, 7  ;;  %s130_s5 = sshll.u32 %s184_s1, 4  ;;  %s131_s5 = int_to_ptr.vmem [resolvable:$true] %s130_s5 }
   0x8   :  { %93 = vmatprep.subr.bf16.mxu0 %v155_v5  ;;  %v25_v13 = vld [vmem:[%s240_s2] sm:$0x3]  ;;  %s161_s0 = scalar_lea.vmem %s131_s5, 256  ;;  %p166_p1 = scmp.lt.s32.totalorder %s131_s5, %s131_s5 }
   0x9   :  { %v29_v12 = vsub.s32 0, %v28_v11  ;;  %v33_v14 = vsub.s32 1, %v28_v11  ;;  %p162_p0 = scmp.ne.s32.totalorder %s131_s5, %s161_s0  ;;  %p167_p2 = scmp.lt.s32.totalorder %s161_s0, %s161_s0 }
   0xb   :  { %94 = vmatpush1.bf16.msra.mxu0 %v157_v6  ;;  %v30_v15 = vrot.slane %v25_v13, %v29_v12  ;;  %v34_v16 = vrot.slane %v25_v13, %v33_v14  ;;  %p168_p3 = por %p167_p2, %p166_p1 }
   0xc   :  { %95 = vmatprep.subr.bf16.mxu0 %v158_v7 }
   0xd   :  { %p169_p4 = pnand %p168_p3, %p162_p0 }
   0xf   :  { %96 = vmatpush1.bf16.msra.mxu0 %v160_v8 }
  0x12   :  { %146 = vmatmul.mubr.msk.bf16.vlgmr.msra.gmra.mxu0 %vm77_vm0, %v16_v9 }
  0xd2   :  { %v115_v17 = vpop.f32.mrf.mxu0 }
  0xd3   :  { %v116_v18 = vadd.f32 %v115_v17, %v30_v15 }
  0xd4   :  { %v117_v19 = vpop.f32.mrf.mxu0 }
  0xd5   :  { %122 = vst [vmem:[#allocation2] sm:$0xff] %v116_v18  ;;  %v118_v20 = vadd.f32 %v117_v19, %v34_v16 }
  0xd6   :  { %v119_v21 = vpop.f32.mrf.mxu0 }
  0xd7   :  { %123 = vst [vmem:[#allocation2 + $0x8] sm:$0xff] %v118_v20 }
  0xd8   :  { %v120_v22 = vpop.f32.mrf.mxu0 }
  0xd9   :  { %172 = shalt.err (!%p169_p4)
}
  0xda   :  { %133 = dma.vmem_to_hbm [thread:$0]  %s131_s5, 256, %s241_s3, [#allocation3]  }
  0xdb   :  { %181 = dma.done.wait [#allocation3], 256  }
  0xdc   :  { %182 = vsyncadd [#allocation3], 4294967040 }
  0xdd   :  { %137 = vsyncpa [#allocation3], 1 }

// kernel: random_walk_forward.2
= control target key start
LH: loop header
LB: loop body
LE: loop exit
PB: predicated region body
PF: predicated region fallthrough
CT: control target
= control target key end

     0   :  { %8 = vsyncpa [#allocation3], 0  ;;  %s178_s12 = smov [#allocation2]   ;;  %s215_s0 = inlined_call_operand.vmem [shape: bf16[8,64], index: 0, kind: input, shape index: {}]   ;;  %s216_s1 = inlined_call_operand.hbm [shape: bf16[64,64], index: 1, kind: input, shape index: {}]   ;;  %s217_s2 = inlined_call_operand.vmem [shape: f32[1,64], index: 2, kind: input, shape index: {}]   ;;  %s218_s3 = inlined_call_operand.vmem [shape: bf16[8,64], index: 3, kind: output, shape index: {}]  }
   0x1   :  { %s16_s13 = sshll.u32 %s178_s12, 4  ;;  %s17_s13 = int_to_ptr.vmem [resolvable:$true] %s16_s13 }
   0x2   :  { %s164_s14 = scalar_lea.vmem %s17_s13, 512  ;;  %p169_p1 = scmp.lt.s32.totalorder %s17_s13, %s17_s13 }
   0x3   :  { %p165_p0 = scmp.ne.s32.totalorder %s17_s13, %s164_s14  ;;  %p170_p2 = scmp.lt.s32.totalorder %s164_s14, %s164_s14 }
   0x5   :  { %p171_p3 = por %p170_p2, %p169_p1 }
   0x7   :  { %p172_p4 = pnand %p171_p3, %p165_p0 }
   0x9   :  { %175 = shalt.err (!%p172_p4)
}
   0xa   :  { %s179_s15 = smov 64   ;;  %s180_s16 = smov 4  }
   0xb   :  { %22 = dma.hbm_to_vmem [thread:$0]  %s216_s1, 512, %s17_s13, [#allocation3], %s179_s15, %s179_s15, %s180_s16  }
   0xc   :  { %176 = dma.done.wait [#allocation3], 512  }
   0xd   :  { %177 = vsyncadd [#allocation3], 4294966784  ;;  %v181_v0 = vmov 0.0   ;;  %vm182_vm0 = vmmov 0   ;;  %v150_v1 = vld [vmem:[#allocation2 + $0x18] sm:$0xff]   ;;  %v151_v2 = vld [vmem:[#allocation2 + $0x10] sm:$0xff]  }
   0xe   :  { %133 = vmatprep.subr.bf16.mxu0 %v181_v0  ;;  %141 = vmatprep.mubr.msk.bf16.mxu0 %vm182_vm0, %v181_v0  ;;  %v152_v3 = vld [vmem:[#allocation2 + $0x8] sm:$0xff]   ;;  %v153_v4 = vld [vmem:[#allocation2] sm:$0xff]   ;;  %v29_v5 = vld [vmem:[%s215_s0] sm:$0xf]  ;;  %vm69_vm1 = vcmask 523264   ;;  %vm115_vm2 = vcmask 519168  }
   0xf   :  { %134 = vmatpush3.bf16.msra.mxu0 %v150_v1  ;;  %v122_v6 = vld [vmem:[%s217_s2] ss:$0 sm:$0xff] }
  0x10   :  { %135 = vmatprep.subr.bf16.mxu0 %v181_v0 }
  0x13   :  { %136 = vmatpush3.bf16.msra.mxu0 %v151_v2 }
  0x14   :  { %137 = vmatprep.subr.bf16.mxu0 %v181_v0 }
  0x17   :  { %138 = vmatpush3.bf16.msra.mxu0 %v152_v3 }
  0x18   :  { %139 = vmatprep.subr.bf16.mxu0 %v181_v0 }
  0x1b   :  { %140 = vmatpush3.bf16.msra.mxu0 %v153_v4 }
  0x1e   :  { %142 = vmatmul.mubr.msk.bf16.vlgmr.msra.gmra.mxu0 %vm69_vm1, %v29_v5 }
  0xde   :  { %v107_v7 = vpop.f32.mrf.mxu0 }
  0xdf   :  { %v108_v8 = vadd.f32 %v122_v6, %v107_v7 }
  0xe0   :  { %v143_v9 = vpop.f32.mrf.mxu0 }
  0xe1   :  { %154 = vtanh.f32 %v108_v8 }
  0xe2   :  { %v110_v10 = vpop.f32.mrf.mxu0 }
  0xe4   :  { %v144_v11 = vpop.f32.mrf.mxu0 }
  0xee   :  { %v155_v12 = vpop.eup %154 }
  0xef   :  { %v114_v13 = vpack.c.bf16 %v155_v12, %v155_v12 }
  0xf1   :  { %116 = vst.msk [vmem:[%s218_s3] sm:$0xf] %vm115_vm2, %v114_v13 }
  0xf2   :  { %121 = vsyncpa [#allocation3], 1 }

</bundles_post_ra>
